<compile_context>
chip_gen: v7x
topology: tpu7x:2x2x1
jax: 0.10.0
libtpu: 0.0.40
codegen_flags: <defaults>
</compile_context>

<pallas_src>
import functools
import math

import jax
import jax.numpy as jnp
from jax.experimental import pallas as pl
from jax.experimental.pallas import tpu as pltpu

MINUTE_SIZE = 4
HOUR_SIZE = 24
WEEKDAY_SIZE = 7
DAY_SIZE = 32
MONTH_SIZE = 13

# Fused temporal-table row layout (matches torch.concat((minute, hour, weekday, day, month))
# and therefore the fc input-block order).
_MINUTE_OFF = 0
_HOUR_OFF = _MINUTE_OFF + MINUTE_SIZE          # 4
_WEEKDAY_OFF = _HOUR_OFF + HOUR_SIZE           # 28
_DAY_OFF = _WEEKDAY_OFF + WEEKDAY_SIZE         # 35
_MONTH_OFF = _DAY_OFF + DAY_SIZE               # 67
_BIAS_ROW = _MONTH_OFF + MONTH_SIZE            # 80  <- conv bias + fc bias folded here
_VOCAB_PAD = 128                               # one full lane width == MXU K dim

# x_mark column order is (month, day, weekday, hour, minute) -- see the PyTorch forward.
_MARK_COL_OFFSETS = (_MONTH_OFF, _DAY_OFF, _WEEKDAY_OFF, _HOUR_OFF, _MINUTE_OFF)
_MARK_COL_MAX = (MONTH_SIZE - 1, DAY_SIZE - 1, WEEKDAY_SIZE - 1, HOUR_SIZE - 1,
                 MINUTE_SIZE - 1)


def _data_embedding_kernel(xv_ref, xm_ref, pe_ref, convw_ref, fused_ref, o_ref):
    """One (seq_tile, batch_block) tile.

    xv_ref    : [B_blk, Lt, 3*c_in]  bf16   circularly shifted (prev|curr|next) values
    xm_ref    : [B_blk, Lt, 5]       int32  offset-encoded time-feature indices
    pe_ref    : [Lt, d]              f32    positional encoding (reused across inner batch axis)
    convw_ref : [3*c_in, d]          bf16   folded Conv1d weight (stacked taps)
    fused_ref : [128, d]             bf16   fc-folded temporal table, row 80 = conv_b + fc_b
    o_ref     : [B_blk, Lt, d]
    """
    b_blk, l_tile, _ = xm_ref.shape
    m = b_blk * l_tile
    d = fused_ref.shape[1]
    vocab = fused_ref.shape[0]

    # Free reshapes: merging the two leading dims keeps the (sublane, lane) tiling
    # because L_tile is a multiple of 16.
    idx = xm_ref[...].reshape(m, xm_ref.shape[2])            # [M, 5] int32
    xv = xv_ref[...].reshape(m, xv_ref.shape[2])             # [M, 3*c_in] bf16

    # Combined multi-hot (disjoint per-feature row offsets) with the bias lane OR'd in.
    # Built as bool ORs + one cast, then ONE K=128 MXU pass over the fused table.
    iota = jax.lax.broadcasted_iota(jnp.int32, (m, vocab), 1)
    mask = iota == _BIAS_ROW
    for c in range(idx.shape[1]):                            # 5 compares on the VPU
        mask = jnp.logical_or(mask, idx[:, c:c + 1] == iota)
    onehot = jnp.where(mask, 1.0, 0.0).astype(fused_ref.dtype)

    acc = jnp.dot(onehot, fused_ref[...], preferred_element_type=jnp.float32)
    # Circular Conv1d folded to a stacked-tap matmul, accumulated into the same f32 acc.
    acc = acc + jnp.dot(xv, convw_ref[...], preferred_element_type=jnp.float32)

    out = acc.reshape(b_blk, l_tile, d) + pe_ref[...][None]   # pe broadcast over sub-batch
    o_ref[...] = out.astype(o_ref.dtype)


def _round_up(x, m):
    return ((x + m - 1) // m) * m


def _largest_divisor_leq(n, cap):
    cap = max(1, min(n, cap))
    for d in range(cap, 0, -1):
        if n % d == 0:
            return d
    return 1


def _positional_encoding(length, d_model):
    position = jnp.arange(length, dtype=jnp.float32)[:, None]
    div_term = jnp.exp(jnp.arange(0, d_model, 2, dtype=jnp.float32)
                       * (-math.log(10000.0) / d_model))
    pe = jnp.zeros((length, d_model), jnp.float32)
    pe = pe.at[:, 0::2].set(jnp.sin(position * div_term))
    pe = pe.at[:, 1::2].set(jnp.cos(position * div_term))
    return pe


def _fold_params(params, mxu_dtype):
    """Fold PyTorch-layout parameters into the kernel's fused operands.

    conv_w: [d_model, c_in, 3] (PyTorch Conv1d), fc_w: [d_model, 5*d_model] (PyTorch Linear).
    Folds run once; use HIGHEST precision so the comparison vs the unfolded reference stays tight.
    """
    d_model = params["hour"].shape[1]
    hi = jax.lax.Precision.HIGHEST

    conv_w = params["conv_w"]
    # taps in (prev | curr | next) order, matching the circular padding of the conv.
    conv_w_t = jnp.concatenate([conv_w[:, :, k].T for k in range(3)], axis=0)  # [3*c_in, d]

    fc_wt = params["fc_w"].T                                   # [5*d_model, d_model]
    tables = (params["minute"], params["hour"], params["weekday"],
              params["day"], params["month"])
    rows = [jnp.dot(tab, fc_wt[k * d_model:(k + 1) * d_model], precision=hi)
            for k, tab in enumerate(tables)]                   # [vocab_k, d_model] each
    bias = (params["conv_b"] + params["fc_b"])[None, :]        # [1, d_model]
    fused = jnp.concatenate(rows + [bias], axis=0)             # [81, d_model], bias at row 80
    fused = jnp.pad(fused, ((0, _VOCAB_PAD - fused.shape[0]), (0, 0)))

    return conv_w_t.astype(mxu_dtype), fused.astype(mxu_dtype)


@functools.partial(jax.jit,
                   static_argnames=("seq_tile", "block_rows", "out_dtype", "mxu_dtype"))
def data_embedding(x, x_mark, params, *, seq_tile=512, block_rows=1024,
                   out_dtype=jnp.float32, mxu_dtype=jnp.bfloat16):
    """x: [B, L, c_in] f32, x_mark: [B, L, >=5] int (month, day, weekday, hour, minute).

    Returns [B, L, d_model] in `out_dtype` (eval-mode DataEmbedding forward).
    Default block_rows=1024 keeps the double-buffered blocks well under v5e's 16 MiB scoped
    VMEM (and v7x's 64 MiB physical) at d_model=512; raise vmem_limit_bytes if growing it.
    """
    B, L, c_in = x.shape
    d_model = params["hour"].shape[1]

    conv_w_t, fused = _fold_params(params, mxu_dtype)

    # Circular-conv neighbours prepared in the wrapper (cheap: c_in << d_model).
    x = x.astype(jnp.float32)
    x_cat = jnp.concatenate(
        [jnp.roll(x, 1, axis=1), x, jnp.roll(x, -1, axis=1)],
        axis=-1).astype(mxu_dtype)                             # [B, L, 3*c_in]

    # Clamp (nn.Embedding would error on OOB; we clamp instead of producing zeros),
    # then offset-encode the indices into the fused table's row space.
    xm = x_mark[..., :5].astype(jnp.int32)
    xm = jnp.clip(xm, 0, jnp.asarray(_MARK_COL_MAX, jnp.int32)[None, None, :])
    xm_off = xm + jnp.asarray(_MARK_COL_OFFSETS, jnp.int32)[None, None, :]

    # Sequence tile: multiple of 16 so the in-kernel (B_blk, Lt, k) -> (M, k) flatten is
    # a free reshape for bf16 operands; pad L so any tile size works (padded rows sliced off).
    l_tile = _round_up(min(seq_tile, _round_up(L, 16)), 16)
    L_pad = _round_up(L, l_tile)
    if L_pad != L:
        x_cat = jnp.pad(x_cat, ((0, 0), (0, L_pad - L), (0, 0)))
        xm_off = jnp.pad(xm_off, ((0, 0), (0, L_pad - L), (0, 0)))

    # Fold a sub-batch into every block so each grid step processes ~block_rows rows.
    n_seq = L_pad // l_tile
    b_blk = _largest_divisor_leq(B, max(1, block_rows // l_tile))
    if n_seq * (B // b_blk) < 2 and B > 1:
        # keep >=2 blocks on a "parallel" axis so v7x's two TensorCores both get work.
        b_blk = _largest_divisor_leq(B, max(1, B // 2))
    n_bat = B // b_blk

    pe = _positional_encoding(L_pad, d_model)

    grid = (n_seq, n_bat)   # batch innermost: the pe block index is constant there -> DMA reused

    out = pl.pallas_call(
        _data_embedding_kernel,
        out_shape=jax.ShapeDtypeStruct((B, L_pad, d_model), out_dtype),
        grid_spec=pltpu.PrefetchScalarGridSpec(
            num_scalar_prefetch=0,
            grid=grid,
            in_specs=[
                pl.BlockSpec((b_blk, l_tile, 3 * c_in), lambda l, b: (b, l, 0)),
                pl.BlockSpec((b_blk, l_tile, 5), lambda l, b: (b, l, 0)),
                pl.BlockSpec((l_tile, d_model), lambda l, b: (l, 0)),
                pl.BlockSpec(conv_w_t.shape, lambda l, b: (0, 0)),
                pl.BlockSpec(fused.shape, lambda l, b: (0, 0)),
            ],
            out_specs=pl.BlockSpec((b_blk, l_tile, d_model), lambda l, b: (b, l, 0)),
        ),
        compiler_params=pltpu.CompilerParams(
            dimension_semantics=("parallel", "parallel")),
    )(x_cat, xm_off, pe, conv_w_t, fused)

    return out[:, :L, :]


def init_params(key, c_in, d_model):
    """Deterministic synthetic parameters matching DataEmbedding(c_in, d_model, freq='t')."""
    ks = jax.random.split(key, 9)
    emb = lambda k, n: jax.random.normal(k, (n, d_model), jnp.float32)
    minute = emb(ks[0], MINUTE_SIZE)
    hour = emb(ks[1], HOUR_SIZE)
    weekday = emb(ks[2], WEEKDAY_SIZE)
    day = emb(ks[3], DAY_SIZE)
    month = emb(ks[4], MONTH_SIZE)
    fb = 1.0 / math.sqrt(5.0 * d_model)
    fc_w = jax.random.uniform(ks[5], (d_model, 5 * d_model), jnp.float32, -fb, fb)
    fc_b = jax.random.uniform(ks[6], (d_model,), jnp.float32, -fb, fb)
    cb = 1.0 / math.sqrt(3.0 * c_in)
    conv_w = jax.random.uniform(ks[7], (d_model, c_in, 3), jnp.float32, -cb, cb)
    conv_b = jax.random.uniform(ks[8], (d_model,), jnp.float32, -cb, cb)
    return dict(minute=minute, hour=hour, weekday=weekday, day=day, month=month,
                fc_w=fc_w, fc_b=fc_b, conv_w=conv_w, conv_b=conv_b)


def reference(x, x_mark, params):
    """Pure-JAX reference mirroring the PyTorch DataEmbedding forward (eval mode)."""
    B, L, _ = x.shape
    d_model = params["hour"].shape[1]
    hi = jax.lax.Precision.HIGHEST
    conv_w, conv_b = params["conv_w"], params["conv_b"]
    x_prev = jnp.roll(x, 1, axis=1)
    x_next = jnp.roll(x, -1, axis=1)
    val = (jnp.dot(x_prev, conv_w[:, :, 0].T, precision=hi)
           + jnp.dot(x, conv_w[:, :, 1].T, precision=hi)
           + jnp.dot(x_next, conv_w[:, :, 2].T, precision=hi) + conv_b)
    minute_x = params["minute"][x_mark[..., 4]]
    hour_x = params["hour"][x_mark[..., 3]]
    weekday_x = params["weekday"][x_mark[..., 2]]
    day_x = params["day"][x_mark[..., 1]]
    month_x = params["month"][x_mark[..., 0]]
    cat = jnp.concatenate([minute_x, hour_x, weekday_x, day_x, month_x], axis=-1)
    temporal = jnp.dot(cat, params["fc_w"].T, precision=hi) + params["fc_b"]
    pe = _positional_encoding(L, d_model)
    return val + temporal + pe[None]


if __name__ == "__main__":
    B, L, c_in, d_model = 2, 8, 4, 32
    key = jax.random.PRNGKey(0)
    k_p, k_x, k_mo, k_d, k_wd, k_h, k_mi = jax.random.split(key, 7)

    params = init_params(k_p, c_in, d_model)

    x = jax.random.normal(k_x, (B, L, c_in), jnp.float32)
    month = jax.random.randint(k_mo, (B, L, 1), 0, MONTH_SIZE, jnp.int32)
    day = jax.random.randint(k_d, (B, L, 1), 0, DAY_SIZE, jnp.int32)
    weekday = jax.random.randint(k_wd, (B, L, 1), 0, WEEKDAY_SIZE, jnp.int32)
    hour = jax.random.randint(k_h, (B, L, 1), 0, HOUR_SIZE, jnp.int32)
    minute = jax.random.randint(k_mi, (B, L, 1), 0, MINUTE_SIZE, jnp.int32)
    x_mark = jnp.concatenate([month, day, weekday, hour, minute], axis=2)  # [B, L, 5]

    out = data_embedding(x, x_mark, params)
    out = jax.block_until_ready(out)

    ref = reference(x, x_mark, params)
    assert out.shape == (B, L, d_model)
    # Tolerance covers bf16 rounding of the MXU operands (the only deliberate precision loss:
    # folds and epilogue are f32/HIGHEST); structural bugs (wrong offsets / row mapping)
    # would produce O(1) errors.
    assert jnp.allclose(out, ref, atol=2e-2, rtol=2e-2), "mismatch vs reference"

    print("KERNEL_OK")
</pallas_src>

<mosaic_0001>
module attributes {stable_mosaic.version = 11 : i64} {
  func.func @_data_embedding_kernel(%arg0: i32, %arg1: i32, %arg2: memref<1x16x12xbf16, #tpu.memory_space<vmem>>, %arg3: memref<1x16x5xi32, #tpu.memory_space<vmem>>, %arg4: memref<16x32xf32, #tpu.memory_space<vmem>>, %arg5: memref<12x32xbf16, #tpu.memory_space<vmem>>, %arg6: memref<128x32xbf16, #tpu.memory_space<vmem>>, %arg7: memref<1x16x32xf32, #tpu.memory_space<vmem>>) attributes {dimension_semantics = [#tpu.dimension_semantics<parallel>, #tpu.dimension_semantics<parallel>], iteration_bounds = array<i64: 1, 2>, scalar_prefetch = 0 : i64, scratch_operands = 0 : i64, tpu.core_type = #tpu.core_type<tc>, window_params = [{transform_indices = @transform_0, window_bounds = array<i64: 1, 16, 12>}, {transform_indices = @transform_1, window_bounds = array<i64: 1, 16, 5>}, {transform_indices = @transform_2, window_bounds = array<i64: 16, 32>}, {pipeline_mode = #tpu.pipeline_mode<synchronous>, transform_indices = @transform_3, window_bounds = array<i64: 12, 32>}, {pipeline_mode = #tpu.pipeline_mode<synchronous>, transform_indices = @transform_4, window_bounds = array<i64: 128, 32>}, {transform_indices = @transform_5, window_bounds = array<i64: 1, 16, 32>}]} {
    %c0 = arith.constant 0 : index
    %c0_0 = arith.constant 0 : index
    %c0_1 = arith.constant 0 : index
    %0 = vector.load %arg3[%c0, %c0_0, %c0_1] : memref<1x16x5xi32, #tpu.memory_space<vmem>>, vector<1x16x5xi32>
    %1 = vector.shape_cast %0 : vector<1x16x5xi32> to vector<16x5xi32>
    %c0_2 = arith.constant 0 : index
    %c0_3 = arith.constant 0 : index
    %c0_4 = arith.constant 0 : index
    %2 = vector.load %arg2[%c0_2, %c0_3, %c0_4] : memref<1x16x12xbf16, #tpu.memory_space<vmem>>, vector<1x16x12xbf16>
    %3 = vector.shape_cast %2 : vector<1x16x12xbf16> to vector<16x12xbf16>
    %4 = tpu.iota {dimensions = array<i32: 1>} : vector<16x128xi32>
    %c80_i32 = arith.constant 80 : i32
    %5 = vector.broadcast %c80_i32 : i32 to vector<16x128xi32>
    %6 = arith.cmpi eq, %4, %5 : vector<16x128xi32>
    %7 = vector.extract_strided_slice %1 {offsets = [0, 0], sizes = [16, 1], strides = [1, 1]} : vector<16x5xi32> to vector<16x1xi32>
    %8 = vector.broadcast %7 : vector<16x1xi32> to vector<16x128xi32>
    %9 = arith.cmpi eq, %8, %4 : vector<16x128xi32>
    %10 = arith.ori %6, %9 : vector<16x128xi1>
    %11 = vector.extract_strided_slice %1 {offsets = [0, 1], sizes = [16, 1], strides = [1, 1]} : vector<16x5xi32> to vector<16x1xi32>
    %12 = vector.broadcast %11 : vector<16x1xi32> to vector<16x128xi32>
    %13 = arith.cmpi eq, %12, %4 : vector<16x128xi32>
    %14 = arith.ori %10, %13 : vector<16x128xi1>
    %15 = vector.extract_strided_slice %1 {offsets = [0, 2], sizes = [16, 1], strides = [1, 1]} : vector<16x5xi32> to vector<16x1xi32>
    %16 = vector.broadcast %15 : vector<16x1xi32> to vector<16x128xi32>
    %17 = arith.cmpi eq, %16, %4 : vector<16x128xi32>
    %18 = arith.ori %14, %17 : vector<16x128xi1>
    %19 = vector.extract_strided_slice %1 {offsets = [0, 3], sizes = [16, 1], strides = [1, 1]} : vector<16x5xi32> to vector<16x1xi32>
    %20 = vector.broadcast %19 : vector<16x1xi32> to vector<16x128xi32>
    %21 = arith.cmpi eq, %20, %4 : vector<16x128xi32>
    %22 = arith.ori %18, %21 : vector<16x128xi1>
    %23 = vector.extract_strided_slice %1 {offsets = [0, 4], sizes = [16, 1], strides = [1, 1]} : vector<16x5xi32> to vector<16x1xi32>
    %24 = vector.broadcast %23 : vector<16x1xi32> to vector<16x128xi32>
    %25 = arith.cmpi eq, %24, %4 : vector<16x128xi32>
    %26 = arith.ori %22, %25 : vector<16x128xi1>
    %cst = arith.constant 1.000000e+00 : f32
    %cst_5 = arith.constant 0.000000e+00 : f32
    %27 = vector.broadcast %cst : f32 to vector<16x128xf32>
    %28 = vector.broadcast %cst_5 : f32 to vector<16x128xf32>
    %29 = arith.select %26, %27, %28 : vector<16x128xi1>, vector<16x128xf32>
    %30 = arith.truncf %29 : vector<16x128xf32> to vector<16x128xbf16>
    %c0_6 = arith.constant 0 : index
    %c0_7 = arith.constant 0 : index
    %31 = vector.load %arg6[%c0_6, %c0_7] : memref<128x32xbf16, #tpu.memory_space<vmem>>, vector<128x32xbf16>
    %cst_8 = arith.constant dense<0.000000e+00> : vector<16x32xf32>
    %32 = tpu.matmul %30, %31, %cst_8 {dimension_numbers = #tpu.dot_dimension_numbers<[1], [0], [0], [1], [0, 0, 1, 1], [], []>} : vector<16x128xbf16>, vector<128x32xbf16>, vector<16x32xf32> -> vector<16x32xf32>
    %c0_9 = arith.constant 0 : index
    %c0_10 = arith.constant 0 : index
    %33 = vector.load %arg5[%c0_9, %c0_10] : memref<12x32xbf16, #tpu.memory_space<vmem>>, vector<12x32xbf16>
    %cst_11 = arith.constant dense<0.000000e+00> : vector<16x32xf32>
    %34 = tpu.matmul %3, %33, %cst_11 {dimension_numbers = #tpu.dot_dimension_numbers<[1], [0], [0], [1], [0, 0, 1, 1], [], []>} : vector<16x12xbf16>, vector<12x32xbf16>, vector<16x32xf32> -> vector<16x32xf32>
    %35 = arith.addf %32, %34 : vector<16x32xf32>
    %36 = vector.shape_cast %35 : vector<16x32xf32> to vector<1x16x32xf32>
    %c0_12 = arith.constant 0 : index
    %c0_13 = arith.constant 0 : index
    %37 = vector.load %arg4[%c0_12, %c0_13] : memref<16x32xf32, #tpu.memory_space<vmem>>, vector<16x32xf32>
    %38 = vector.shape_cast %37 : vector<16x32xf32> to vector<1x16x32xf32>
    %39 = arith.addf %36, %38 : vector<1x16x32xf32>
    %c0_14 = arith.constant 0 : index
    %c0_15 = arith.constant 0 : index
    %c0_16 = arith.constant 0 : index
    %40 = vector.load %arg7[%c0_14, %c0_15, %c0_16] : memref<1x16x32xf32, #tpu.memory_space<vmem>>, vector<1x16x32xf32>
    tpu.vector_store %arg7[%c0_14, %c0_15, %c0_16], %39 {strides = array<i32>} : memref<1x16x32xf32, #tpu.memory_space<vmem>>, vector<1x16x32xf32>,
    return
  }
  func.func @transform_0(%arg0: i32, %arg1: i32) -> (i32, i32, i32) {
    %c0_i32 = arith.constant 0 : i32
    %c0_i32_0 = arith.constant 0 : i32
    return %arg1, %arg0, %c0_i32 : i32, i32, i32
  }
  func.func @transform_1(%arg0: i32, %arg1: i32) -> (i32, i32, i32) {
    %c0_i32 = arith.constant 0 : i32
    %c0_i32_0 = arith.constant 0 : i32
    return %arg1, %arg0, %c0_i32 : i32, i32, i32
  }
  func.func @transform_2(%arg0: i32, %arg1: i32) -> (i32, i32) {
    %c0_i32 = arith.constant 0 : i32
    %c0_i32_0 = arith.constant 0 : i32
    return %arg0, %c0_i32 : i32, i32
  }
  func.func @transform_3(%arg0: i32, %arg1: i32) -> (i32, i32) {
    %c0_i32 = arith.constant 0 : i32
    %c0_i32_0 = arith.constant 0 : i32
    %c0_i32_1 = arith.constant 0 : i32
    return %c0_i32, %c0_i32_0 : i32, i32
  }
  func.func @transform_4(%arg0: i32, %arg1: i32) -> (i32, i32) {
    %c0_i32 = arith.constant 0 : i32
    %c0_i32_0 = arith.constant 0 : i32
    %c0_i32_1 = arith.constant 0 : i32
    return %c0_i32, %c0_i32_0 : i32, i32
  }
  func.func @transform_5(%arg0: i32, %arg1: i32) -> (i32, i32, i32) {
    %c0_i32 = arith.constant 0 : i32
    %c0_i32_0 = arith.constant 0 : i32
    return %arg1, %arg0, %c0_i32 : i32, i32, i32
  }
}

</mosaic_0001>

<bundles_post_ra>
// kernel: data_embedding.1
= control target key start
LH: loop header
LB: loop body
LE: loop exit
PB: predicated region body
PF: predicated region fallthrough
CT: control target
= control target key end

     0   :  { %s851_s18 = smov 0   ;;  %s853_s19 = smov 0   ;;  %s941_s0 = inlined_call_operand.vmem [shape: bf16[2,16,12], index: 0, kind: input, shape index: {}]   ;;  %s942_s1 = inlined_call_operand.vmem [shape: s32[2,16,5], index: 1, kind: input, shape index: {}]   ;;  %s943_s2 = inlined_call_operand.vmem [shape: f32[16,32], index: 2, kind: input, shape index: {}]   ;;  %s944_s3 = inlined_call_operand.vmem [shape: bf16[12,32], index: 3, kind: input, shape index: {}]   ;;  %s945_s4 = inlined_call_operand.vmem [shape: bf16[128,32], index: 4, kind: input, shape index: {}]   ;;  %s946_s5 = inlined_call_operand.vmem [shape: f32[2,16,32], index: 5, kind: output, shape index: {}]  }
   0x1   :  { %s855_s20 = smov 0  }
   0x2 LB: > { %s24_s21 = sadd.s32 1, %s808_s19  ;;  %p681_p0 = scmp.ge.s32.totalorder %s812_s20, 1  ;;  %s812_s20 = sphi %s855_s20, %s15_s20   ;;  %s808_s19 = sphi %s853_s19, %s948_s19   ;;  %s804_s18 = sphi %s851_s18, %s947_s18  }
   0x3   : > { %p25_p1 = scmp.ge.s32.totalorder %s24_s21, 2  ;;  %p236_p2 = scmp.lt.s32.totalorder %s812_s20, 3 }
   0x5   : > { %s950_s21 = smov (%p25_p1, %s24_s21), 0  ;;  %p237_p3 = pnand %p681_p0, %p236_p2 }
   0x6   : > { %p287_p4 = scmp.lt.s32.totalorder (!%p237_p3), %s804_s18, 1  ;;  %v780_v0 = vld [vmem:[%s945_s4] sm:$0xff] (!%p237_p3)   ;;  %v814_v1 = vmov (!%p237_p3), 1   ;;  %v815_v2 = vmov (!%p237_p3), 0   ;;  %v816_v3 = vmov (!%p237_p3), 0.0   ;;  %v781_v5 = vld [vmem:[%s945_s4 + $0x8] sm:$0xff] (!%p237_p3)   ;;  %v327_v21 = vlaneseq (!%p237_p3) }
   0x7   : > { %240 = sbr.rel (%p237_p3) target bundleno = 393 (0x189), region = 40  ;;  %773 = vset.pattern.permute.xlu1 (!%p237_p3), %v814_v1  ;;  %772 = vset.pattern.permute.xlu0 (!%p237_p3), %v815_v2  ;;  %v782_v7 = vld [vmem:[%s945_s4 + $0x10] sm:$0xff] (!%p237_p3)   ;;  %v817_v8 = vmov (!%p237_p3), 2   ;;  %v783_v9 = vld [vmem:[%s945_s4 + $0x18] sm:$0xff] (!%p237_p3)   ;;  %v784_v10 = vld [vmem:[%s945_s4 + $0x20] sm:$0xff] (!%p237_p3)   ;;  %v818_v11 = vmov (!%p237_p3), 3  }
   0x8   : > { %721 = vmatprep.subr.bf16.mxu1 (!%p237_p3), %v816_v3  ;;  %715 = vmatprep.subr.bf16.mxu0 (!%p237_p3), %v816_v3  ;;  %v785_v12 = vld [vmem:[%s945_s4 + $0x28] sm:$0xff] (!%p237_p3)   ;;  %v819_v13 = vmov (!%p237_p3), 4   ;;  %v786_v14 = vld [vmem:[%s945_s4 + $0x30] sm:$0xff] (!%p237_p3)   ;;  %v787_v15 = vld [vmem:[%s944_s3] sm:$0x3f] (!%p237_p3)   ;;  %vm415_vm0 = vcmask (!%p237_p3), 1045504  }
   0x9   : > { %722 = vmatpush3.bf16.msra.mxu1 (!%p237_p3), %v780_v0  ;;  %v417_v16 = vsel (!%p237_p3), %vm415_vm0, %v787_v15, 0  ;;  %vm820_vm1 = vmmov (!%p237_p3), 0   ;;  %vm411_vm2 = vcmask (!%p237_p3), 97280   ;;  %v789_v18 = vld [vmem:[%s945_s4 + $0x38] sm:$0xff] (!%p237_p3)   ;;  %v328_v24 = vand.u32 (!%p237_p3), 127, %v327_v21  ;;  %v549_v39 = vld [vmem:[%s943_s2] sm:$0xff] (!%p237_p3) }
   0xa   : > { %723 = vmatprep.subr.bf16.mxu1 (!%p237_p3), %v816_v3  ;;  %716 = vmatpush3.bf16.msra.mxu0 (!%p237_p3), %v417_v16  ;;  %v550_v43 = vld [vmem:[%s943_s2 + $0x8] sm:$0xff] (!%p237_p3) }
   0xb   : > { %717 = vmatprep.mubr.msk.bf16.mxu0 (!%p237_p3), %vm820_vm1, %v816_v3  ;;  %737 = vmatprep.mubr.msk.bf16.mxu1 (!%p237_p3), %vm820_vm1, %v816_v3  ;;  %vm329_vm3 = vcmp.eq.s32.totalorder (!%p237_p3), %v328_v24, 80 }
   0xd   : > { %724 = vmatpush3.bf16.msra.mxu1 (!%p237_p3), %v781_v5 }
   0xe   : > { %s952_s18 = smov (!%p287_p4, %s804_s18), 1  ;;  %725 = vmatprep.subr.bf16.mxu1 %v816_v3 }
   0xf   : > { %s702_s24 = sshll.u32 %s952_s18, 4  ;;  %s701_s17 = sshll.u32 %s952_s18, 3 }
  0x10   : > { %s304_s27 = scalar_lea.vmem %s942_s1, %s702_s24  ;;  %s294_s25 = scalar_lea.vmem %s941_s0, %s701_s17 }
  0x11   : > { %v323_v4 = vld [vmem:[%s304_s27] sm:$0xff]  ;;  %v324_v6 = vld [vmem:[%s304_s27 + $0x8] sm:$0xff]  ;;  %726 = vmatpush3.bf16.msra.mxu1 %v782_v7  ;;  %s320_s7 = scalar_lea.vmem %s946_s5, %s702_s24 }
  0x12   : > { %341 = vperm.xlu1 %773, %v323_v4   ;;  %331 = vperm.xlu0 %772, %v323_v4   ;;  %v788_v17 = vld [vmem:[%s294_s25] sm:$0xff]  }
  0x13   : > { %727 = vmatprep.subr.bf16.mxu1 %v816_v3  ;;  %718 = vmatmul.mubr.msk.bf16.vlgmr.msra.gmra.mrb[0].mxu0 %vm411_vm2, %v788_v17 }
  0x15   : > { %728 = vmatpush3.bf16.msra.mxu1 %v783_v9 }
  0x16   : > { %344 = vperm.xlu1 %773, %v324_v6   ;;  %334 = vperm.xlu0 %772, %v324_v6  }
  0x17   : > { %729 = vmatprep.subr.bf16.mxu1 %v816_v3 }
  0x19   : > { %730 = vmatpush3.bf16.msra.mxu1 %v784_v10 }
  0x1a   : > { %775 = vset.pattern.permute.xlu1 %v817_v8  ;;  %774 = vset.pattern.permute.xlu0 %v817_v8 }
  0x1b   : > { %354 = vperm.xlu1 %775, %v324_v6   ;;  %351 = vperm.xlu0 %774, %v323_v4  }
  0x1c   : > { %731 = vmatprep.subr.bf16.mxu1 %v816_v3 }
  0x1d   : > { %732 = vmatpush3.bf16.msra.mxu1 %v785_v12 }
  0x1e   : > { %733 = vmatprep.subr.bf16.mxu1 %v816_v3 }
  0x1f   : > { %776 = vset.pattern.permute.xlu1 %v818_v11  ;;  %777 = vset.pattern.permute.xlu0 %v818_v11 }
  0x20   : > { %361 = vperm.xlu1 %776, %v323_v4   ;;  %364 = vperm.xlu0 %777, %v324_v6  }
  0x21   : > { %734 = vmatpush3.bf16.msra.mxu1 %v786_v14 }
  0x22   : > { %735 = vmatprep.subr.bf16.mxu1 %v816_v3 }
  0x24   : > { %778 = vset.pattern.permute.xlu1 %v819_v13  ;;  %779 = vset.pattern.permute.xlu0 %v819_v13 }
  0x25   : > { %371 = vperm.xlu1 %778, %v323_v4   ;;  %736 = vmatpush3.bf16.msra.mxu1 %v789_v18 }
  0x29   : > { %374 = vperm.xlu1 %778, %v324_v6  }
  0x91   : > { %v342_v19 = vpop.permute.xlu1 %341  ;;  %v332_v20 = vpop.permute.xlu0 %331 }
  0x92   : > { %vm336_vm4 = vcmp.eq.s32.totalorder %v332_v20, %v328_v24  ;;  %vm346_vm6 = vcmp.eq.s32.totalorder %v342_v19, %v328_v24 }
  0x93   : > { %vm338_vm7 = vmor %vm329_vm3, %vm336_vm4 }
  0x94   : > { %vm348_vm11 = vmor %vm338_vm7, %vm346_vm6 }
  0x95   : > { %v345_v22 = vpop.permute.xlu1 %344  ;;  %v335_v23 = vpop.permute.xlu0 %334 }
  0x96   : > { %vm337_vm5 = vcmp.eq.s32.totalorder %v335_v23, %v328_v24  ;;  %vm347_vm8 = vcmp.eq.s32.totalorder %v345_v22, %v328_v24 }
  0x97   : > { %vm339_vm9 = vmor %vm329_vm3, %vm337_vm5 }
  0x98   : > { %vm349_vm13 = vmor %vm339_vm9, %vm347_vm8  ;;  %vm553_vm8 = vcmask 261120  }
  0x9a   : > { %v355_v25 = vpop.permute.xlu1 %354  ;;  %v352_v26 = vpop.permute.xlu0 %351 }
  0x9b   : > { %vm357_vm10 = vcmp.eq.s32.totalorder %v355_v25, %v328_v24  ;;  %vm356_vm12 = vcmp.eq.s32.totalorder %v352_v26, %v328_v24 }
  0x9c   : > { %vm359_vm15 = vmor %vm349_vm13, %vm357_vm10 }
  0x9d   : > { %vm358_vm1 = vmor %vm348_vm11, %vm356_vm12 }
  0x9f   : > { %v362_v27 = vpop.permute.xlu1 %361  ;;  %v365_v28 = vpop.permute.xlu0 %364 }
  0xa0   : > { %vm366_vm14 = vcmp.eq.s32.totalorder %v362_v27, %v328_v24  ;;  %vm367_vm2 = vcmp.eq.s32.totalorder %v365_v28, %v328_v24 }
  0xa1   : > { %vm368_vm4 = vmor %vm358_vm1, %vm366_vm14 }
  0xa2   : > { %vm369_vm5 = vmor %vm359_vm15, %vm367_vm2 }
  0xa4   : > { %v372_v29 = vpop.permute.xlu1 %371 }
  0xa5   : > { %vm376_vm0 = vcmp.eq.s32.totalorder %v372_v29, %v328_v24 }
  0xa6   : > { %vm378_vm3 = vmor %vm368_vm4, %vm376_vm0 }
  0xa7   : > { %v380_v31 = vsel %vm378_vm3, 1.0, %v816_v3 }
  0xa8   : > { %v375_v30 = vpop.permute.xlu1 %374 }
  0xa9   : > { %vm377_vm6 = vcmp.eq.s32.totalorder %v375_v30, %v328_v24 }
  0xaa   : > { %vm379_vm7 = vmor %vm369_vm5, %vm377_vm6 }
  0xab   : > { %v381_v32 = vsel %vm379_vm7, 1.0, %v816_v3 }
  0xac   : > { %v382_v33 = vpack.c.bf16 %v381_v32, %v380_v31 }
  0xae   : > { %738 = vmatmul.mubr.bf16.vlgmr.msra.gmra.mrb[0].mxu1 %v382_v33 }
  0xe6   : > { %v453_v34 = vpop.f32.mrb[0].mxu0 }
  0xe7   : > { %v719_v35 = vpop.f32.mrb[1].mxu0 }
  0xe8   : > { %v456_v36 = vpop.f32.mrb[2].mxu0 }
  0xe9   : > { %v720_v37 = vpop.f32.mrb[3].mxu0 }
 0x181   : > { %v542_v38 = vpop.f32.mrb[0].mxu1 }
 0x182   : > { %v543_v40 = vadd.f32 %v542_v38, %v453_v34  ;;  %v739_v41 = vpop.f32.mrb[1].mxu1 }
 0x183   : > { %v545_v42 = vpop.f32.mrb[2].mxu1 }
 0x184   : > { %v551_v44 = vadd.f32 %v549_v39, %v543_v40  ;;  %v546_v45 = vadd.f32 %v545_v42, %v456_v36  ;;  %v740_v46 = vpop.f32.mrb[3].mxu1 }
 0x186   : > { %554 = vst.msk [vmem:[%s320_s7] sm:$0xff] %vm553_vm8, %v551_v44  ;;  %v552_v47 = vadd.f32 %v550_v43, %v546_v45 }
 0x188   : > { %555 = vst.msk [vmem:[%s320_s7 + $0x8] sm:$0xff] %vm553_vm8, %v552_v47 }
 0x189 PF: > { %s15_s20 = sadd.s32 1, %s812_s20   ;;  %s947_s18 = smov %s808_s19 }
 0x18a   : > { %p12_p5 = scmp.ge.s32.totalorder %s15_s20, 4   ;;  %s948_s19 = smov %s950_s21 }
 0x18c   :  { %14 = sbr.rel (!%p12_p5) target bundleno = 2 (0x2), region = 76 }

</bundles_post_ra>
